<compile_context>
chip_gen: v7x
topology: tpu7x:2x2x1
jax: 0.10.0
libtpu: 0.0.40
codegen_flags: <defaults>
</compile_context>

<pallas_src>
import math

import jax
import jax.numpy as jnp
from jax.experimental import pallas as pl
from jax.experimental.pallas import tpu as pltpu


def cma_la_kernel(
    x_ref, y_ref, adj_ref,
    wqkv_ref, bqkv_ref,
    w1_ref, b1_ref, w2_ref, b2_ref,
    out_ref,
):
    Bb, T, Ca = x_ref.shape
    Cb = y_ref.shape[2]
    H = (wqkv_ref.shape[1] - Ca) // 2
    Co = out_ref.shape[2]
    N = Bb * T

    x = x_ref[...]                                    # (Bb, T, Ca) f32
    adj = adj_ref[...]                                # (Bb, T, T)  f32

    x2 = x.reshape(N, Ca)
    y2 = y_ref[...].reshape(N, Cb)

    # ---- fused Q|K|V projection: [x|y] @ blockdiag(wq, [wk|wv]) (bf16 MXU, f32 acc)
    xy = jnp.concatenate([x2, y2], axis=-1).astype(jnp.bfloat16)      # (N, Ca+Cb)
    qkv = jnp.dot(xy, wqkv_ref[...],
                  preferred_element_type=jnp.float32) + bqkv_ref[...]  # (N, 2H+Ca)

    q3 = qkv[:, :H].reshape(Bb, T, H).astype(jnp.bfloat16)
    k3 = qkv[:, H:2 * H].reshape(Bb, T, H).astype(jnp.bfloat16)
    v3 = qkv[:, 2 * H:].reshape(Bb, T, Ca).astype(jnp.bfloat16)

    # ---- cross attention with multiplicative adjacency gating ----
    scale = 1.0 / math.sqrt(H)
    s = jnp.einsum("bqh,bkh->bqk", q3, k3,
                   preferred_element_type=jnp.float32) * scale         # (Bb, T, T)
    s = s * adj
    s = s - jnp.max(s, axis=-1, keepdims=True)                         # stable softmax
    p = jnp.exp(s)
    attn = p * pl.reciprocal(jnp.sum(p, axis=-1, keepdims=True), approx=True)
    ctx = jnp.einsum("bqk,bkc->bqc", attn.astype(jnp.bfloat16), v3,
                     preferred_element_type=jnp.float32)               # (Bb, T, Ca)

    # ---- residual + LayerNorm(modal_a), eps=1e-5; gamma/beta folded into w1/b1 ----
    new_x = x2 + ctx.reshape(N, Ca)
    mu = jnp.mean(new_x, axis=-1, keepdims=True)
    var = jnp.mean(jnp.square(new_x - mu), axis=-1, keepdims=True)
    nx = (new_x - mu) * jax.lax.rsqrt(var + 1e-5)

    # ---- FFN: Conv1d(k=1) -> GELU(tanh) -> Conv1d(k=1); dropout = identity ----
    h = jnp.dot(nx.astype(jnp.bfloat16), w1_ref[...],
                preferred_element_type=jnp.float32) + b1_ref[...]      # (N, Dff)
    h = jax.nn.gelu(h, approximate=True)
    out2 = jnp.dot(h.astype(jnp.bfloat16), w2_ref[...],
                   preferred_element_type=jnp.float32) + b2_ref[...]   # (N, Co=128)

    # lane-dense store: Co=128 sits exactly on the 128-lane axis, single slab write
    out_ref[...] = out2.reshape(Bb, T, Co).astype(out_ref.dtype)


def _tpu_budget():
    """(vmem_capacity_bytes, tensorcores) — defensive, falls back conservatively."""
    vmem = 64 * 2 ** 20
    try:
        info = pltpu.get_tpu_info()
        vmem = int(getattr(info, "vmem_capacity_bytes", vmem) or vmem)
    except Exception:
        pass
    # v7x: 64 MiB VMEM per TC, 2 TCs/chip; v5e/v6e: 128 MiB, 1 TC.
    num_cores = 2 if vmem <= 64 * 2 ** 20 else 1
    return vmem, num_cores


def _pick_block_b(B, T, num_cores):
    """Largest batch-block with bounded stacked MXU rows.  On 1-TC chips allow a
    single big step; on multi-TC chips prefer step counts that divide evenly
    across cores (ideally >= 2 steps per core for per-core pipelining)."""
    max_rows = 2048 if num_cores <= 1 else 512
    divisors = [d for d in range(1, B + 1) if B % d == 0 and d * T <= max_rows]
    if not divisors:
        return 1
    if num_cores > 1 and B >= num_cores:
        for min_steps in (2 * num_cores, num_cores):
            cands = [d for d in divisors
                     if (B // d) % num_cores == 0 and (B // d) >= min_steps]
            if cands:
                return max(cands)
    return max(divisors)


def _vmem_limit_bytes(block_b, T, Ca, Cb, H, Dff, Co, vmem_capacity):
    f32, bf16 = 4, 2
    rows = block_b * T
    # double-buffered pipelined blocks (x, y, adj, out)
    blocks = 2 * f32 * (rows * Ca + rows * Cb + block_b * T * T + rows * Co)
    # resident weight/bias blocks (constant index map; still double-buffered)
    weights = 2 * (bf16 * ((Ca + Cb) * (2 * H + Ca) + Ca * Dff + Dff * Co)
                   + f32 * ((2 * H + Ca) + Dff + Co))
    # in-kernel intermediates (xy, qkv, scores, ffn activations) + margin
    interm = f32 * (rows * ((Ca + Cb) + (2 * H + Ca) + Dff + Co)
                    + 3 * block_b * T * T)
    est = 2 * (blocks + weights + interm)
    # leave headroom below the physical scratchpad (~50 MiB on v7x, ~100 MiB on v5e/v6e)
    cap = int(vmem_capacity * 0.78)
    return int(min(cap, max(32 * 2 ** 20, est)))


def cma_la_forward(x, y, adj, params, *, block_b=None):
    """x: [B, T, modal_a], y: [B, T, modal_b], adj: [B, T, T] -> [B, 128, T]."""
    B, T, Ca = x.shape
    Cb = y.shape[-1]
    H = params["wq"].shape[1]
    Dff = params["w1"].shape[1]
    Co = params["w2"].shape[1]  # 128 (hardcoded in the module)

    vmem_cap, num_cores = _tpu_budget()
    if block_b is None:
        block_b = _pick_block_b(B, T, num_cores)
    assert B % block_b == 0, (B, block_b)

    # Fused block-diagonal Q|K|V weight: [x|y] @ [[wq, 0], [0, wk|wv]].
    # bf16 only for MXU operands / weight DMAs; accumulation & elementwise stay f32.
    wkv = jnp.concatenate([params["wk"], params["wv"]], axis=1)          # (Cb, H+Ca)
    wqkv = jnp.zeros((Ca + Cb, 2 * H + Ca), jnp.float32)
    wqkv = wqkv.at[:Ca, :H].set(params["wq"]).at[Ca:, H:].set(wkv)
    wqkv = wqkv.astype(jnp.bfloat16)
    bqkv = jnp.concatenate([params["bq"], params["bk"], params["bv"]], axis=1)

    # Fold LayerNorm affine into conv1 (dropout is identity in eval mode).
    w1f = (params["gamma"].reshape(Ca, 1) * params["w1"]).astype(jnp.bfloat16)
    b1f = params["beta"] @ params["w1"] + params["b1"]                   # (1, Dff)
    w2 = params["w2"].astype(jnp.bfloat16)                               # (Dff, Co)
    b2 = params["b2"]                                                    # (1, Co)

    full = lambda i: (0, 0)
    blk3 = lambda i: (i, 0, 0)

    N = B * T
    flops = (2 * N * (Ca + Cb) * (2 * H + Ca)      # fused qkv projection
             + 2 * B * T * T * H                   # scores
             + 2 * B * T * T * Ca                  # attn @ v
             + 2 * N * Ca * Dff                    # conv1
             + 2 * N * Dff * Co)                   # conv2
    transcendentals = B * T * T + N * Dff + 2 * N  # exp + tanh + rsqrt/recip
    bytes_accessed = (4 * (B * T * Ca + B * T * Cb + B * T * T + B * T * Co)
                      + 2 * ((Ca + Cb) * (2 * H + Ca) + Ca * Dff + Dff * Co)
                      + 4 * ((2 * H + Ca) + Dff + Co))

    out_tc = pl.pallas_call(
        cma_la_kernel,
        out_shape=jax.ShapeDtypeStruct((B, T, Co), jnp.float32),
        grid_spec=pltpu.PrefetchScalarGridSpec(
            num_scalar_prefetch=0,
            grid=(B // block_b,),
            in_specs=[
                pl.BlockSpec((block_b, T, Ca), blk3),     # x
                pl.BlockSpec((block_b, T, Cb), blk3),     # y
                pl.BlockSpec((block_b, T, T), blk3),      # adj
                pl.BlockSpec((Ca + Cb, 2 * H + Ca), full),  # fused wq|wk|wv (bf16)
                pl.BlockSpec((1, 2 * H + Ca), full),        # fused bq|bk|bv
                pl.BlockSpec((Ca, Dff), full),            # conv1 weight (gamma-folded, bf16)
                pl.BlockSpec((1, Dff), full),             # conv1 bias (beta-folded)
                pl.BlockSpec((Dff, Co), full),            # conv2 weight (bf16)
                pl.BlockSpec((1, Co), full),              # conv2 bias
            ],
            out_specs=pl.BlockSpec((block_b, T, Co), blk3),
        ),
        compiler_params=pltpu.CompilerParams(
            dimension_semantics=("parallel",),
            vmem_limit_bytes=_vmem_limit_bytes(block_b, T, Ca, Cb, H, Dff, Co, vmem_cap),
        ),
        cost_estimate=pl.CostEstimate(
            flops=int(flops),
            transcendentals=int(transcendentals),
            bytes_accessed=int(bytes_accessed),
        ),
    )(x, y, adj, wqkv, bqkv, w1f, b1f, w2, b2)

    # Kernel writes lane-dense [B, T, 128]; single XLA permute to the PyTorch
    # module's [B, 128, T] output layout.
    return jnp.transpose(out_tc, (0, 2, 1))


def init_params(key, modal_a, modal_b, hid_dim, d_ff, out_ch=128):
    ks = jax.random.split(key, 8)
    u = lambda k, shape, fan_in: jax.random.uniform(
        k, shape, jnp.float32, -1.0 / math.sqrt(fan_in), 1.0 / math.sqrt(fan_in)
    )
    return {
        # cross-attention projections (Linear-style init)
        "wq": u(ks[0], (modal_a, hid_dim), modal_a),
        "bq": u(ks[1], (1, hid_dim), modal_a),
        "wk": u(ks[2], (modal_b, hid_dim), modal_b),
        "bk": u(ks[3], (1, hid_dim), modal_b),
        "wv": u(ks[4], (modal_b, modal_a), modal_b),
        "bv": u(ks[5], (1, modal_a), modal_b),
        # LayerNorm(modal_a)
        "gamma": jnp.ones((1, modal_a), jnp.float32),
        "beta": jnp.zeros((1, modal_a), jnp.float32),
        # ffn: Conv1d(modal_a, d_ff, 1) and Conv1d(d_ff, 128, 1); weights stored
        # transposed so the kernel does (rows, Cin) @ (Cin, Cout).
        "w1": u(ks[6], (modal_a, d_ff), modal_a),
        "b1": jnp.zeros((1, d_ff), jnp.float32),
        "w2": u(ks[7], (d_ff, out_ch), d_ff),
        "b2": jnp.zeros((1, out_ch), jnp.float32),
    }


if __name__ == "__main__":
    B, T = 2, 8
    modal_a, modal_b = 32, 16
    hid_dim, d_ff = 32, 64

    key = jax.random.PRNGKey(0)
    kx, ky, kadj, kp = jax.random.split(key, 4)
    x = jax.random.normal(kx, (B, T, modal_a), jnp.float32)
    y = jax.random.normal(ky, (B, T, modal_b), jnp.float32)
    adj = jax.random.uniform(kadj, (B, T, T), jnp.float32)

    params = init_params(kp, modal_a, modal_b, hid_dim, d_ff)

    out = cma_la_forward(x, y, adj, params)
    jax.block_until_ready(out)
    assert out.shape == (B, 128, T), out.shape
    print("KERNEL_OK")
</pallas_src>

<mosaic_0001>
module attributes {stable_mosaic.version = 11 : i64} {
  func.func @cma_la_kernel(%arg0: i32, %arg1: memref<1x8x32xf32, #tpu.memory_space<vmem>>, %arg2: memref<1x8x16xf32, #tpu.memory_space<vmem>>, %arg3: memref<1x8x8xf32, #tpu.memory_space<vmem>>, %arg4: memref<48x96xbf16, #tpu.memory_space<vmem>>, %arg5: memref<1x96xf32, #tpu.memory_space<vmem>>, %arg6: memref<32x64xbf16, #tpu.memory_space<vmem>>, %arg7: memref<1x64xf32, #tpu.memory_space<vmem>>, %arg8: memref<64x128xbf16, #tpu.memory_space<vmem>>, %arg9: memref<1x128xf32, #tpu.memory_space<vmem>>, %arg10: memref<1x8x128xf32, #tpu.memory_space<vmem>>) attributes {dimension_semantics = [#tpu.dimension_semantics<parallel>], iteration_bounds = array<i64: 2>, scalar_prefetch = 0 : i64, scratch_operands = 0 : i64, tpu.core_type = #tpu.core_type<tc>, window_params = [{transform_indices = @transform_0, window_bounds = array<i64: 1, 8, 32>}, {transform_indices = @transform_1, window_bounds = array<i64: 1, 8, 16>}, {transform_indices = @transform_2, window_bounds = array<i64: 1, 8, 8>}, {pipeline_mode = #tpu.pipeline_mode<synchronous>, transform_indices = @transform_3, window_bounds = array<i64: 48, 96>}, {pipeline_mode = #tpu.pipeline_mode<synchronous>, transform_indices = @transform_4, window_bounds = array<i64: 1, 96>}, {pipeline_mode = #tpu.pipeline_mode<synchronous>, transform_indices = @transform_5, window_bounds = array<i64: 32, 64>}, {pipeline_mode = #tpu.pipeline_mode<synchronous>, transform_indices = @transform_6, window_bounds = array<i64: 1, 64>}, {pipeline_mode = #tpu.pipeline_mode<synchronous>, transform_indices = @transform_7, window_bounds = array<i64: 64, 128>}, {pipeline_mode = #tpu.pipeline_mode<synchronous>, transform_indices = @transform_8, window_bounds = array<i64: 1, 128>}, {transform_indices = @transform_9, window_bounds = array<i64: 1, 8, 128>}]} {
    %c0 = arith.constant 0 : index
    %c0_0 = arith.constant 0 : index
    %c0_1 = arith.constant 0 : index
    %0 = vector.load %arg1[%c0, %c0_0, %c0_1] : memref<1x8x32xf32, #tpu.memory_space<vmem>>, vector<1x8x32xf32>
    %c0_2 = arith.constant 0 : index
    %c0_3 = arith.constant 0 : index
    %c0_4 = arith.constant 0 : index
    %1 = vector.load %arg3[%c0_2, %c0_3, %c0_4] : memref<1x8x8xf32, #tpu.memory_space<vmem>>, vector<1x8x8xf32>
    %2 = vector.shape_cast %0 : vector<1x8x32xf32> to vector<8x32xf32>
    %c0_5 = arith.constant 0 : index
    %c0_6 = arith.constant 0 : index
    %c0_7 = arith.constant 0 : index
    %3 = vector.load %arg2[%c0_5, %c0_6, %c0_7] : memref<1x8x16xf32, #tpu.memory_space<vmem>>, vector<1x8x16xf32>
    %4 = vector.shape_cast %3 : vector<1x8x16xf32> to vector<8x16xf32>
    %5 = tpu.concatenate %2, %4 in 1 : vector<8x32xf32>, vector<8x16xf32> -> vector<8x48xf32>
    %6 = arith.truncf %5 : vector<8x48xf32> to vector<8x48xbf16>
    %c0_8 = arith.constant 0 : index
    %c0_9 = arith.constant 0 : index
    %7 = vector.load %arg4[%c0_8, %c0_9] : memref<48x96xbf16, #tpu.memory_space<vmem>>, vector<48x96xbf16>
    %cst = arith.constant dense<0.000000e+00> : vector<8x96xf32>
    %8 = tpu.matmul %6, %7, %cst {dimension_numbers = #tpu.dot_dimension_numbers<[1], [0], [0], [1], [0, 0, 1, 1], [], []>} : vector<8x48xbf16>, vector<48x96xbf16>, vector<8x96xf32> -> vector<8x96xf32>
    %c0_10 = arith.constant 0 : index
    %c0_11 = arith.constant 0 : index
    %9 = vector.load %arg5[%c0_10, %c0_11] : memref<1x96xf32, #tpu.memory_space<vmem>>, vector<1x96xf32>
    %10 = vector.broadcast %9 : vector<1x96xf32> to vector<8x96xf32>
    %11 = arith.addf %8, %10 : vector<8x96xf32>
    %12 = vector.extract_strided_slice %11 {offsets = [0, 0], sizes = [8, 32], strides = [1, 1]} : vector<8x96xf32> to vector<8x32xf32>
    %13 = vector.shape_cast %12 : vector<8x32xf32> to vector<1x8x32xf32>
    %14 = arith.truncf %13 : vector<1x8x32xf32> to vector<1x8x32xbf16>
    %15 = vector.extract_strided_slice %11 {offsets = [0, 32], sizes = [8, 32], strides = [1, 1]} : vector<8x96xf32> to vector<8x32xf32>
    %16 = vector.shape_cast %15 : vector<8x32xf32> to vector<1x8x32xf32>
    %17 = arith.truncf %16 : vector<1x8x32xf32> to vector<1x8x32xbf16>
    %18 = vector.extract_strided_slice %11 {offsets = [0, 64], sizes = [8, 32], strides = [1, 1]} : vector<8x96xf32> to vector<8x32xf32>
    %19 = vector.shape_cast %18 : vector<8x32xf32> to vector<1x8x32xf32>
    %20 = arith.truncf %19 : vector<1x8x32xf32> to vector<1x8x32xbf16>
    "tpu.trace_start"() <{level = 10 : i32, message = "bqh,bkh->bqk"}> : () -> ()
    %cst_12 = arith.constant dense<0.000000e+00> : vector<1x8x8xf32>
    %21 = tpu.matmul %14, %17, %cst_12 {dimension_numbers = #tpu.dot_dimension_numbers<[2], [2], [1], [1], [0, 0, 0, 1, 1, 1], [0], [0]>} : vector<1x8x32xbf16>, vector<1x8x32xbf16>, vector<1x8x8xf32> -> vector<1x8x8xf32>
    "tpu.trace_stop"() : () -> ()
    %cst_13 = arith.constant 0.176776692 : f32
    %22 = vector.broadcast %cst_13 : f32 to vector<1x8x8xf32>
    %23 = arith.mulf %21, %22 : vector<1x8x8xf32>
    %24 = arith.mulf %23, %1 : vector<1x8x8xf32>
    %cst_14 = arith.constant dense<0xFF800000> : vector<1x8xf32>
    %25 = vector.multi_reduction <maximumf>, %24, %cst_14 [2] : vector<1x8x8xf32> to vector<1x8xf32>
    %26 = vector.shape_cast %25 : vector<1x8xf32> to vector<1x8x1xf32>
    %27 = vector.broadcast %26 : vector<1x8x1xf32> to vector<1x8x8xf32>
    %28 = arith.subf %24, %27 : vector<1x8x8xf32>
    %29 = math.exp %28 : vector<1x8x8xf32>
    %cst_15 = arith.constant dense<0.000000e+00> : vector<1x8xf32>
    %30 = vector.multi_reduction <add>, %29, %cst_15 [2] : vector<1x8x8xf32> to vector<1x8xf32>
    %31 = vector.shape_cast %30 : vector<1x8xf32> to vector<1x8x1xf32>
    %32 = tpu.reciprocal %31 {approx = true} : vector<1x8x1xf32> -> vector<1x8x1xf32>
    %33 = vector.broadcast %32 : vector<1x8x1xf32> to vector<1x8x8xf32>
    %34 = arith.mulf %29, %33 : vector<1x8x8xf32>
    %35 = arith.truncf %34 : vector<1x8x8xf32> to vector<1x8x8xbf16>
    "tpu.trace_start"() <{level = 10 : i32, message = "bqk,bkc->bqc"}> : () -> ()
    %cst_16 = arith.constant dense<0.000000e+00> : vector<1x8x32xf32>
    %36 = tpu.matmul %35, %20, %cst_16 {dimension_numbers = #tpu.dot_dimension_numbers<[2], [1], [1], [2], [0, 0, 0, 1, 1, 2], [0], [0]>} : vector<1x8x8xbf16>, vector<1x8x32xbf16>, vector<1x8x32xf32> -> vector<1x8x32xf32>
    "tpu.trace_stop"() : () -> ()
    %37 = vector.shape_cast %36 : vector<1x8x32xf32> to vector<8x32xf32>
    %38 = arith.addf %2, %37 : vector<8x32xf32>
    %cst_17 = arith.constant dense<0.000000e+00> : vector<8xf32>
    %39 = vector.multi_reduction <add>, %38, %cst_17 [1] : vector<8x32xf32> to vector<8xf32>
    %40 = vector.shape_cast %39 : vector<8xf32> to vector<8x1xf32>
    %cst_18 = arith.constant 3.200000e+01 : f32
    %41 = vector.broadcast %cst_18 : f32 to vector<8x1xf32>
    %42 = arith.divf %40, %41 : vector<8x1xf32>
    %43 = vector.broadcast %42 : vector<8x1xf32> to vector<8x32xf32>
    %44 = arith.subf %38, %43 : vector<8x32xf32>
    %45 = arith.mulf %44, %44 : vector<8x32xf32>
    %cst_19 = arith.constant dense<0.000000e+00> : vector<8xf32>
    %46 = vector.multi_reduction <add>, %45, %cst_19 [1] : vector<8x32xf32> to vector<8xf32>
    %47 = vector.shape_cast %46 : vector<8xf32> to vector<8x1xf32>
    %cst_20 = arith.constant 3.200000e+01 : f32
    %48 = vector.broadcast %cst_20 : f32 to vector<8x1xf32>
    %49 = arith.divf %47, %48 : vector<8x1xf32>
    %50 = vector.broadcast %42 : vector<8x1xf32> to vector<8x32xf32>
    %51 = arith.subf %38, %50 : vector<8x32xf32>
    %cst_21 = arith.constant 9.99999974E-6 : f32
    %52 = vector.broadcast %cst_21 : f32 to vector<8x1xf32>
    %53 = arith.addf %49, %52 : vector<8x1xf32>
    %54 = math.rsqrt %53 : vector<8x1xf32>
    %55 = vector.broadcast %54 : vector<8x1xf32> to vector<8x32xf32>
    %56 = arith.mulf %51, %55 : vector<8x32xf32>
    %57 = arith.truncf %56 : vector<8x32xf32> to vector<8x32xbf16>
    %c0_22 = arith.constant 0 : index
    %c0_23 = arith.constant 0 : index
    %58 = vector.load %arg6[%c0_22, %c0_23] : memref<32x64xbf16, #tpu.memory_space<vmem>>, vector<32x64xbf16>
    %cst_24 = arith.constant dense<0.000000e+00> : vector<8x64xf32>
    %59 = tpu.matmul %57, %58, %cst_24 {dimension_numbers = #tpu.dot_dimension_numbers<[1], [0], [0], [1], [0, 0, 1, 1], [], []>} : vector<8x32xbf16>, vector<32x64xbf16>, vector<8x64xf32> -> vector<8x64xf32>
    %c0_25 = arith.constant 0 : index
    %c0_26 = arith.constant 0 : index
    %60 = vector.load %arg7[%c0_25, %c0_26] : memref<1x64xf32, #tpu.memory_space<vmem>>, vector<1x64xf32>
    %61 = vector.broadcast %60 : vector<1x64xf32> to vector<8x64xf32>
    %62 = arith.addf %59, %61 : vector<8x64xf32>
    %63 = arith.mulf %62, %62 : vector<8x64xf32>
    %64 = arith.mulf %62, %63 : vector<8x64xf32>
    %cst_27 = arith.constant 4.471500e-02 : f32
    %65 = vector.broadcast %cst_27 : f32 to vector<8x64xf32>
    %66 = arith.mulf %65, %64 : vector<8x64xf32>
    %67 = arith.addf %62, %66 : vector<8x64xf32>
    %cst_28 = arith.constant 0.797884583 : f32
    %68 = vector.broadcast %cst_28 : f32 to vector<8x64xf32>
    %69 = arith.mulf %68, %67 : vector<8x64xf32>
    %70 = math.tanh %69 : vector<8x64xf32>
    %cst_29 = arith.constant 1.000000e+00 : f32
    %71 = vector.broadcast %cst_29 : f32 to vector<8x64xf32>
    %72 = arith.addf %71, %70 : vector<8x64xf32>
    %cst_30 = arith.constant 5.000000e-01 : f32
    %73 = vector.broadcast %cst_30 : f32 to vector<8x64xf32>
    %74 = arith.mulf %73, %72 : vector<8x64xf32>
    %75 = arith.mulf %62, %74 : vector<8x64xf32>
    %76 = arith.truncf %75 : vector<8x64xf32> to vector<8x64xbf16>
    %c0_31 = arith.constant 0 : index
    %c0_32 = arith.constant 0 : index
    %77 = vector.load %arg8[%c0_31, %c0_32] : memref<64x128xbf16, #tpu.memory_space<vmem>>, vector<64x128xbf16>
    %cst_33 = arith.constant dense<0.000000e+00> : vector<8x128xf32>
    %78 = tpu.matmul %76, %77, %cst_33 {dimension_numbers = #tpu.dot_dimension_numbers<[1], [0], [0], [1], [0, 0, 1, 1], [], []>} : vector<8x64xbf16>, vector<64x128xbf16>, vector<8x128xf32> -> vector<8x128xf32>
    %c0_34 = arith.constant 0 : index
    %c0_35 = arith.constant 0 : index
    %79 = vector.load %arg9[%c0_34, %c0_35] : memref<1x128xf32, #tpu.memory_space<vmem>>, vector<1x128xf32>
    %80 = vector.broadcast %79 : vector<1x128xf32> to vector<8x128xf32>
    %81 = arith.addf %78, %80 : vector<8x128xf32>
    %82 = vector.shape_cast %81 : vector<8x128xf32> to vector<1x8x128xf32>
    %c0_36 = arith.constant 0 : index
    %c0_37 = arith.constant 0 : index
    %c0_38 = arith.constant 0 : index
    %83 = vector.load %arg10[%c0_36, %c0_37, %c0_38] : memref<1x8x128xf32, #tpu.memory_space<vmem>>, vector<1x8x128xf32>
    tpu.vector_store %arg10[%c0_36, %c0_37, %c0_38], %82 {strides = array<i32>} : memref<1x8x128xf32, #tpu.memory_space<vmem>>, vector<1x8x128xf32>,
    return
  }
  func.func @transform_0(%arg0: i32) -> (i32, i32, i32) {
    %c0_i32 = arith.constant 0 : i32
    %c0_i32_0 = arith.constant 0 : i32
    %c0_i32_1 = arith.constant 0 : i32
    return %arg0, %c0_i32, %c0_i32_0 : i32, i32, i32
  }
  func.func @transform_1(%arg0: i32) -> (i32, i32, i32) {
    %c0_i32 = arith.constant 0 : i32
    %c0_i32_0 = arith.constant 0 : i32
    %c0_i32_1 = arith.constant 0 : i32
    return %arg0, %c0_i32, %c0_i32_0 : i32, i32, i32
  }
  func.func @transform_2(%arg0: i32) -> (i32, i32, i32) {
    %c0_i32 = arith.constant 0 : i32
    %c0_i32_0 = arith.constant 0 : i32
    %c0_i32_1 = arith.constant 0 : i32
    return %arg0, %c0_i32, %c0_i32_0 : i32, i32, i32
  }
  func.func @transform_3(%arg0: i32) -> (i32, i32) {
    %c0_i32 = arith.constant 0 : i32
    %c0_i32_0 = arith.constant 0 : i32
    %c0_i32_1 = arith.constant 0 : i32
    return %c0_i32, %c0_i32_0 : i32, i32
  }
  func.func @transform_4(%arg0: i32) -> (i32, i32) {
    %c0_i32 = arith.constant 0 : i32
    %c0_i32_0 = arith.constant 0 : i32
    %c0_i32_1 = arith.constant 0 : i32
    return %c0_i32, %c0_i32_0 : i32, i32
  }
  func.func @transform_5(%arg0: i32) -> (i32, i32) {
    %c0_i32 = arith.constant 0 : i32
    %c0_i32_0 = arith.constant 0 : i32
    %c0_i32_1 = arith.constant 0 : i32
    return %c0_i32, %c0_i32_0 : i32, i32
  }
  func.func @transform_6(%arg0: i32) -> (i32, i32) {
    %c0_i32 = arith.constant 0 : i32
    %c0_i32_0 = arith.constant 0 : i32
    %c0_i32_1 = arith.constant 0 : i32
    return %c0_i32, %c0_i32_0 : i32, i32
  }
  func.func @transform_7(%arg0: i32) -> (i32, i32) {
    %c0_i32 = arith.constant 0 : i32
    %c0_i32_0 = arith.constant 0 : i32
    %c0_i32_1 = arith.constant 0 : i32
    return %c0_i32, %c0_i32_0 : i32, i32
  }
  func.func @transform_8(%arg0: i32) -> (i32, i32) {
    %c0_i32 = arith.constant 0 : i32
    %c0_i32_0 = arith.constant 0 : i32
    %c0_i32_1 = arith.constant 0 : i32
    return %c0_i32, %c0_i32_0 : i32, i32
  }
  func.func @transform_9(%arg0: i32) -> (i32, i32, i32) {
    %c0_i32 = arith.constant 0 : i32
    %c0_i32_0 = arith.constant 0 : i32
    %c0_i32_1 = arith.constant 0 : i32
    return %arg0, %c0_i32, %c0_i32_0 : i32, i32, i32
  }
}

</mosaic_0001>

<bundles_post_ra>
// kernel: tpu_custom_call.1
= control target key start
LH: loop header
LB: loop body
LE: loop exit
PB: predicated region body
PF: predicated region fallthrough
CT: control target
= control target key end

     0   :  { %s1804_s0 = inlined_call_operand.hbm [shape: f32[2,8,32], index: 0, kind: input, shape index: {}]   ;;  %s1805_s1 = inlined_call_operand.hbm [shape: f32[2,8,16], index: 1, kind: input, shape index: {}]   ;;  %s1806_s2 = inlined_call_operand.hbm [shape: f32[2,8,8], index: 2, kind: input, shape index: {}]   ;;  %s1807_s3 = inlined_call_operand.hbm [shape: bf16[48,96], index: 3, kind: input, shape index: {}]   ;;  %s1808_s4 = inlined_call_operand.vmem [shape: f32[1,96], index: 4, kind: input, shape index: {}]   ;;  %s1809_s5 = inlined_call_operand.vmem [shape: bf16[32,64], index: 5, kind: input, shape index: {}]   ;;  %s1810_s6 = inlined_call_operand.vmem [shape: f32[1,64], index: 6, kind: input, shape index: {}]   ;;  %s1811_s7 = inlined_call_operand.hbm [shape: bf16[64,128], index: 7, kind: input, shape index: {}]   ;;  %s1812_s8 = inlined_call_operand.vmem [shape: f32[1,128], index: 8, kind: input, shape index: {}]   ;;  %s1813_s9 = inlined_call_operand.hbm [shape: f32[2,8,128], index: 9, kind: output, shape index: {}]  }
   0x1   :  { %1833 = sst [smem:[#allocation21_spill]] %s1805_s1 }
   0x2   :  { %1834 = sst [smem:[#allocation22_spill]] %s1807_s3 }
   0x3   :  { %14 = vsyncpa [#allocation3], 0 }
   0x4   :  { %16 = vsyncpa [#allocation3 + $0x1], 0 }
   0x5   :  { %17 = vsyncpa [#allocation6], 0 }
   0x6   :  { %19 = vsyncpa [#allocation6 + $0x1], 0 }
   0x7   :  { %20 = vsyncpa [#allocation9], 0 }
   0x8   :  { %21 = vsyncpa [#allocation4], 0 }
   0x9   :  { %23 = vsyncpa [#allocation4 + $0x1], 0  ;;  %s1453_s30 = smov 0   ;;  %s1455_s10 = smov 0  }
   0xa   :  { %s1457_s11 = smov 0   ;;  %s1459_s12 = smov 0  }
   0xb LB: > { %1835 = sst [smem:[#allocation16_spill]] %s1376_s30  ;;  %s1474_s13 = sadd.s32 4294967295, %s1388_s12   ;;  %s1388_s12 = sphi %s1459_s12, %s1869_s12   ;;  %s1384_s11 = sphi %s1457_s11, %s1873_s11   ;;  %s1380_s10 = sphi %s1455_s10, %s1872_s10   ;;  %s1376_s30 = sphi %s1453_s30, %s1871_s30  }
   0xc   : > { %1836 = sst [smem:[#allocation17_spill]] %s1388_s12  ;;  %s970_s14 = sadd.s32 4294967294, %s1388_s12  }
   0xd   : > { %p49_p0 = scmp.ne.s32.totalorder %s1380_s10, %s1376_s30  ;;  %p1814_p1 = scmp.eq.s32.totalorder %s1474_s13, 0 }
   0xe   : > { %p257_p3 = scmp.eq.s32.totalorder %s970_s14, 1  ;;  %p971_p5 = scmp.ge.s32.totalorder %s1388_s12, 1 }
   0xf   : > { %p1483_p4 = por %p1814_p1, %p49_p0  ;;  %p264_p7 = scmp.lt.s32.totalorder %s1388_s12, 3 }
  0x10   : > { %p1488_p6 = por %p257_p3, %p49_p0  ;;  %s1390_s18 = smov [#allocation8]  }
  0x11   : > { %s1837_s15 = scalar_select %p1483_p4, 1, 0 }
  0x12   : > { %s1838_s16 = scalar_select %p1488_p6, 1, 0 }
  0x13   : > { %p1493_p8 = pnand %p971_p5, %p264_p7  ;;  %s276_s19 = sshll.u32 %s1390_s18, 4  ;;  %s1497_s19 = int_to_ptr.vmem [resolvable:$true] %s276_s19 }
  0x14   : > { %1839 = sst [smem:[#allocation18_spill]] %s1838_s16  ;;  %s1509_s21 = sadd.s32 1, %s1388_s12  }
  0x15   : > { %s1840_s17 = scalar_select %p1493_p8, 1, 0 }
  0x16   : > { %p1083_p9 = pneg %p1493_p8  ;;  %1842 = sst [smem:[#allocation19_spill]] %s1509_s21 }
  0x17   : > { %s36_s22 = sadd.s32 1, %s1384_s11  ;;  %s33_s23 = ssub.s32 %s1388_s12, %s1509_s21 }
  0x18   : > { %p1504_p11 = pnand %p1083_p9, %p1814_p1  ;;  %s1843_s3 = sld [smem:[#allocation22_spill]] }
  0x1a   : > { %s1841_s20 = scalar_select %p1504_p11, 1, 0 }
  0x1b   : > { %p1822_p13 = pneg %p1504_p11 }
  0x1e   : > { %s1168_s26 = scalar_lea.hbm %s1843_s3, 384 }
  0x1f   : > { %p1169_p12 = scmp.ne.s32.totalorder %s1843_s3, %s1168_s26  ;;  %p1175_p5 = scmp.lt.u32.totalorder %s1168_s26, %s1843_s3 }
  0x21   : > { %p1171_p0 = pnand %p1822_p13, %p1169_p12 }
  0x23   : > { %p1172_p3 = pneg %p1171_p0 }
  0x25   : > { %p1177_p7 = pnand %p1175_p5, %p1172_p3 }
  0x27   : > { %1180 = shalt.err (!%p1177_p7)
}
  0x28   : > { %s1181_s18 = scalar_lea.vmem %s1497_s19, 384  ;;  %p1189_p2 = scmp.lt.s32.totalorder %s1497_s19, %s1497_s19 }
  0x29   : > { %p1182_p9 = scmp.ne.s32.totalorder %s1497_s19, %s1181_s18  ;;  %p1190_p12 = scmp.lt.s32.totalorder %s1181_s18, %s1181_s18 }
  0x2b   : > { %p1184_p10 = pnand %p1182_p9, %p1822_p13  ;;  %p1191_p0 = por %p1190_p12, %p1189_p2 }
  0x2d   : > { %p1185_p1 = pneg %p1184_p10 }
  0x2f   : > { %p1192_p6 = pnand %p1191_p0, %p1185_p1 }
  0x31   : > { %1195 = shalt.err (!%p1192_p6)
}
  0x32   : > { %s1817_s24 = smov 64   ;;  %s1818_s25 = smov 4  }
  0x33   : > { %1086 = dma.hbm_to_vmem [thread:$0]  (!%p1504_p11), %s1843_s3, 384, %s1497_s19, [#allocation9], %s1817_s24, %s1817_s24, %s1818_s25  }
  0x34   : > { %p34_p1 = scmp.eq.s32.totalorder %s33_s23, 0  ;;  %p43_p2 = scmp.ne.s32.totalorder %s1384_s11, %s1380_s10 }
  0x35   : > { %p44_p6 = scmp.eq.s32.totalorder %s1388_s12, 0  ;;  %p1106_p10 = scmp.lt.s32.totalorder %s1388_s12, 2 }
  0x36   : > { %s1549_s28 = scalar_select %p34_p1, %s1384_s11, %s36_s22  }
  0x37   : > { %p45_p3 = por %p44_p6, %p43_p2  ;;  %p1845_p5 = scmp.eq.s32.totalorder %s1474_s13, 1 }
  0x38   : > { %1844 = sst [smem:[#allocation20_spill]] %s1549_s28  ;;  %s1819_s14 = sand.u32 1, %s1384_s11  }
  0x39   : > { %p1553_p7 = por %p1845_p5, %p43_p2  ;;  %s1559_s18 = sshll.u32 %s1388_s12, 7 }
  0x3a   : > { %s1563_s21 = sshll.u32 %s1819_s14, 3  ;;  %p1565_p9 = pnand %p1106_p10, %p45_p3 }
  0x3b   : > { %s1846_s29 = scalar_select %p1553_p7, 1, 0 }
  0x3c   : > { %s1847_s19 = scalar_select %p1565_p9, 1, 0 }
  0x3d   : > { %s333_s22 = sand.u32 1, %s1388_s12   ;;  %s1848_s1 = sld [smem:[#allocation21_spill]] }
  0x3e   : > { %s337_s24 = scalar_lea.vmem [#allocation5], %s1563_s21  ;;  %s1579_s14 = scalar_lea.sflag [#allocation6], %s333_s22 }
  0x3f   : > { %s344_s25 = sshll.u32 %s337_s24, 4  ;;  %p1585_p0 = pneg %p1565_p9  ;;  %s1577_s25 = int_to_ptr.vmem [resolvable:$true] %s344_s25 }
  0x41   : > { %s1849_s28 = scalar_select %p1585_p0, 1, 0 }
  0x43   : > { %s1574_s27 = scalar_lea.hbm %s1848_s1, %s1559_s18  ;;  %s1201_s12 = scalar_lea.hbm %s1848_s1, 256 }
  0x44   : > { %s1196_s3 = scalar_lea.hbm %s1574_s27, 128  ;;  %p1202_p6 = scmp.lt.u32.totalorder %s1574_s27, %s1848_s1 }
  0x45   : > { %p1197_p12 = scmp.ne.s32.totalorder %s1574_s27, %s1196_s3  ;;  %p1203_p10 = scmp.lt.u32.totalorder %s1201_s12, %s1196_s3 }
  0x46   : > { %p1205_p5 = scmp.lt.u32.totalorder %s1196_s3, %s1574_s27 }
  0x47   : > { %p1199_p1 = pnand %p1585_p0, %p1197_p12  ;;  %p1204_p3 = por %p1203_p10, %p1202_p6 }
  0x49   : > { %p1200_p2 = pneg %p1199_p1  ;;  %p1206_p13 = por %p1205_p5, %p1204_p3 }
  0x4b   : > { %p1207_p7 = pnand %p1206_p13, %p1200_p2 }
  0x4d   : > { %1210 = shalt.err (!%p1207_p7)
}
  0x4e   : > { %s1211_s22 = scalar_lea.vmem %s1577_s25, 128  ;;  %s1393_s23 = smov [#allocation5]  }
  0x4f   : > { %p1212_p12 = scmp.ne.s32.totalorder %s1577_s25, %s1211_s22  ;;  %s1216_s26 = sshll.u32 %s1393_s23, 4  ;;  %s1217_s26 = int_to_ptr.vmem [resolvable:$false] %s1216_s26 }
  0x50   : > { %s1218_s16 = scalar_lea.vmem %s1217_s26, 256  ;;  %p1219_p8 = scmp.lt.s32.totalorder %s1577_s25, %s1217_s26 }
  0x51   : > { %p1214_p1 = pnand %p1212_p12, %p1585_p0  ;;  %p1220_p11 = scmp.lt.s32.totalorder %s1218_s16, %s1211_s22 }
  0x53   : > { %p1215_p4 = pneg %p1214_p1  ;;  %p1221_p6 = por %p1220_p11, %p1219_p8 }
  0x55   : > { %p1222_p10 = pnand %p1221_p6, %p1215_p4 }
  0x57   : > { %1225 = shalt.err (!%p1222_p10)
}
  0x58   : > { %1096 = dma.hbm_to_vmem [thread:$0]  (!%p1565_p9), %s1574_s27, 128, %s1577_s25, %s1579_s14  }
  0x59   : > { %s1394_s3 = smov [#allocation10]   ;;  %s1226_s23 = scalar_lea.hbm %s1811_s7, 512 }
  0x5a   : > { %s298_s12 = sshll.u32 %s1394_s3, 4  ;;  %p1227_p8 = scmp.ne.s32.totalorder %s1811_s7, %s1226_s23  ;;  %s299_s12 = int_to_ptr.vmem [resolvable:$true] %s298_s12 }
  0x5b   : > { %p1850_p4 = scmp.ne.s32.totalorder %s1841_s20, 0  ;;  %p1233_p2 = scmp.lt.u32.totalorder %s1226_s23, %s1811_s7 }
  0x5d   : > { %p1851_p11 = pneg %p1850_p4 }
  0x5f   : > { %p1229_p13 = pnand %p1227_p8, %p1851_p11 }
  0x61   : > { %p1230_p7 = pneg %p1229_p13 }
  0x63   : > { %p1235_p3 = pnand %p1233_p2, %p1230_p7 }
  0x65   : > { %1238 = shalt.err (!%p1235_p3)
}
  0x66   : > { %s1239_s25 = scalar_lea.vmem %s299_s12, 512  ;;  %p1852_p12 = pmov %p1851_p11 }
  0x67   : > { %p1240_p5 = scmp.ne.s32.totalorder %s299_s12, %s1239_s25  ;;  %p1247_p10 = scmp.lt.s32.totalorder %s299_s12, %s299_s12 }
  0x68   : > { %p1248_p9 = scmp.lt.s32.totalorder %s1239_s25, %s1239_s25 }
  0x69   : > { %p1242_p1 = pnand %p1240_p5, %p1852_p12 }
  0x6a   : > { %p1249_p0 = por %p1248_p9, %p1247_p10 }
  0x6b   : > { %p1243_p6 = pneg %p1242_p1 }
  0x6d   : > { %p1250_p8 = pnand %p1249_p0, %p1243_p6 }
  0x6f   : > { %1253 = shalt.err (!%p1250_p8)
}
  0x70   : > { %s1853_s1 = smov 4   ;;  %s1854_s30 = smov 64  }
  0x71   : > { %1089 = dma.hbm_to_vmem [thread:$0]  (!%p1850_p4), %s1811_s7, 512, %s299_s12, [#allocation9], %s1854_s30, %s1854_s30, %s1853_s1  }
  0x72   : > { %s1636_s26 = scalar_lea.hbm %s1804_s0, %s1559_s18  ;;  %s319_s20 = scalar_lea.vmem [#allocation2], %s1563_s21 }
  0x73   : > { %s326_s22 = sshll.u32 %s319_s20, 4  ;;  %s1855_s16 = sand.u32 1, %s1384_s11   ;;  %s327_s22 = int_to_ptr.vmem [resolvable:$true] %s326_s22 }
  0x74   : > { %s316_s25 = scalar_lea.sflag [#allocation3], %s1855_s16  ;;  %s1254_s27 = scalar_lea.hbm %s1636_s26, 128 }
  0x75   : > { %p1255_p9 = scmp.ne.s32.totalorder %s1636_s26, %s1254_s27  ;;  %p1856_p0 = scmp.ne.s32.totalorder %s1849_s28, 0 }
  0x76   : > { %s1259_s30 = scalar_lea.hbm %s1804_s0, 256  ;;  %p1260_p4 = scmp.lt.u32.totalorder %s1636_s26, %s1804_s0 }
  0x77   : > { %p1257_p11 = pnand %p1255_p9, %p1856_p0  ;;  %p1261_p7 = scmp.lt.u32.totalorder %s1259_s30, %s1254_s27 }
  0x78   : > { %p1263_p3 = scmp.lt.u32.totalorder %s1254_s27, %s1636_s26 }
  0x79   : > { %p1258_p13 = pneg %p1257_p11  ;;  %p1262_p2 = por %p1261_p7, %p1260_p4 }
  0x7b   : > { %p1264_p5 = por %p1263_p3, %p1262_p2 }
  0x7d   : > { %p1265_p12 = pnand %p1264_p5, %p1258_p13 }
  0x7f   : > { %1268 = shalt.err (!%p1265_p12)
}
  0x80   : > { %s1269_s23 = scalar_lea.vmem %s327_s22, 128  ;;  %s1395_s20 = smov [#allocation2]  }
  0x81   : > { %p1270_p1 = scmp.ne.s32.totalorder %s327_s22, %s1269_s23  ;;  %s1274_s16 = sshll.u32 %s1395_s20, 4  ;;  %s1275_s16 = int_to_ptr.vmem [resolvable:$false] %s1274_s16 }
  0x82   : > { %s1276_s12 = scalar_lea.vmem %s1275_s16, 256  ;;  %p1277_p8 = scmp.lt.s32.totalorder %s327_s22, %s1275_s16 }
  0x83   : > { %p1272_p6 = pnand %p1270_p1, %p1856_p0  ;;  %p1278_p9 = scmp.lt.s32.totalorder %s1276_s12, %s1269_s23 }
  0x85   : > { %p1273_p10 = pneg %p1272_p6  ;;  %p1279_p11 = por %p1278_p9, %p1277_p8 }
  0x87   : > { %p1280_p4 = pnand %p1279_p11, %p1273_p10 }
  0x89   : > { %1283 = shalt.err (!%p1280_p4)
}
  0x8a   : > { %p1857_p7 = scmp.ne.s32.totalorder %s1847_s19, 0  ;;  %s1662_s30 = scalar_lea.hbm %s1806_s2, %s1559_s18 }
  0x8b   : > { %s355_s3 = scalar_lea.vmem [#allocation7], %s1563_s21  ;;  %s1284_s23 = scalar_lea.hbm %s1662_s30, 128 }
  0x8c   : > { %1093 = dma.hbm_to_vmem [thread:$0]  (!%p1857_p7), %s1636_s26, 128, %s327_s22, %s316_s25  }
  0x8d   : > { %s362_s24 = sshll.u32 %s355_s3, 4  ;;  %p1285_p13 = scmp.ne.s32.totalorder %s1662_s30, %s1284_s23  ;;  %s363_s24 = int_to_ptr.vmem [resolvable:$true] %s362_s24 }
  0x8e   : > { %s1289_s26 = scalar_lea.hbm %s1806_s2, 256  ;;  %p1290_p5 = scmp.lt.u32.totalorder %s1662_s30, %s1806_s2 }
  0x8f   : > { %p1287_p2 = pnand %p1285_p13, %p1856_p0  ;;  %p1291_p12 = scmp.lt.u32.totalorder %s1289_s26, %s1284_s23 }
  0x90   : > { %p1293_p6 = scmp.lt.u32.totalorder %s1284_s23, %s1662_s30 }
  0x91   : > { %p1288_p3 = pneg %p1287_p2  ;;  %p1292_p1 = por %p1291_p12, %p1290_p5 }
  0x93   : > { %p1294_p10 = por %p1293_p6, %p1292_p1 }
  0x95   : > { %p1295_p8 = pnand %p1294_p10, %p1288_p3 }
  0x97   : > { %1298 = shalt.err (!%p1295_p8)
}
  0x98   : > { %s1299_s21 = scalar_lea.vmem %s363_s24, 128  ;;  %s1396_s18 = smov [#allocation7]  }
  0x99   : > { %p1300_p9 = scmp.ne.s32.totalorder %s363_s24, %s1299_s21  ;;  %s1304_s12 = sshll.u32 %s1396_s18, 4  ;;  %s1305_s12 = int_to_ptr.vmem [resolvable:$false] %s1304_s12 }
  0x9a   : > { %s1306_s27 = scalar_lea.vmem %s1305_s12, 256  ;;  %p1307_p13 = scmp.lt.s32.totalorder %s363_s24, %s1305_s12 }
  0x9b   : > { %p1302_p11 = pnand %p1300_p9, %p1856_p0  ;;  %p1308_p2 = scmp.lt.s32.totalorder %s1306_s27, %s1299_s21 }
  0x9d   : > { %p1303_p4 = pneg %p1302_p11  ;;  %p1309_p7 = por %p1308_p2, %p1307_p13 }
  0x9f   : > { %p1310_p5 = pnand %p1309_p7, %p1303_p4 }
  0xa1   : > { %1313 = shalt.err (!%p1310_p5)
}
  0xa2   : > { %p1858_p12 = scmp.ne.s32.totalorder %s1847_s19, 0  ;;  %p1859_p3 = scmp.ne.s32.totalorder %s1840_s17, 0 }
  0xa3   : > { %s1686_s28 = sand.u32 (!%p1859_p3), 1, %s1380_s10   ;;  %p1860_p0 = scmp.ne.s32.totalorder (!%p1859_p3), %s1837_s15, 0 }
  0xa4   : > { %1099 = dma.hbm_to_vmem [thread:$0]  (!%p1858_p12), %s1662_s30, 128, %s363_s24, %s1579_s14  }
  0xa5   : > { %371 = sbr.rel (%p1859_p3) target bundleno = 2167 (0x877), region = 56  ;;  %s1689_s1 = sshll.u32 (!%p1859_p3), %s1686_s28, 3 }
  0xa6   : > { %s374_s3 = scalar_lea.sflag (!%p1859_p3), [#allocation3], %s1686_s28  ;;  %s377_s23 = scalar_lea.vmem (!%p1859_p3), [#allocation2], %s1689_s1 }
  0xac   : > { %1359 = dma.done.wait (%p1860_p0), %s374_s3, 128  }
  0xad   : > { %1361 = vsyncadd (%p1860_p0), %s374_s3, 4294967168  ;;  %s382_s17 = sand.u32 1, %s1474_s13   ;;  %s386_s19 = scalar_lea.vmem [#allocation5], %s1689_s1 }
  0xae   : > { %s383_s14 = scalar_lea.sflag [#allocation6], %s382_s17 }
  0xaf   : > { %1363 = dma.done.wait (%p1860_p0), %s383_s14, 256  }
  0xb0   : > { %1365 = vsyncadd (%p1860_p0), %s383_s14, 4294967040  ;;  %s395_s30 = scalar_lea.vmem [#allocation7], %s1689_s1  ;;  %p1861_p7 = scmp.eq.s32.totalorder %s1474_s13, 0 }
  0xb2   : > { %1367 = dma.done.wait (%p1861_p7), [#allocation9], 896   ;;  %p1862_p1 = pmov %p1861_p7 }
  0xb3   : > { %v1397_v0 = vmov 0.0   ;;  %vm1398_vm0 = vmmov 0   ;;  %v451_v1 = vld [vmem:[%s386_s19] sm:$0xff]  ;;  %s1399_s15 = smov 32   ;;  %v1153_v4 = vld [vmem:[#allocation8 + $0x10] sm:$0xff]   ;;  %vm456_vm1 = vcmask 261120  }
  0xb4   : > { %1369 = vsyncadd (%p1862_p1), [#allocation9], 4294966400  ;;  %1025 = vmatprep.subr.bf16.mxu0 %v1397_v0  ;;  %1031 = vmatprep.mubr.msk.bf16.mxu0 %vm1398_vm0, %v1397_v0  ;;  %v1151_v2 = vld [vmem:[#allocation8] sm:$0xff]   ;;  %v1152_v3 = vld [vmem:[#allocation8 + $0x8] sm:$0xff]   ;;  %vm490_vm2 = vcmask 392192   ;;  %s1400_s16 = smov 96  }
  0xb5   : > { %1041 = vmatprep.subr.bf16.mxu1 %v1397_v0  ;;  %1043 = vmatprep.mubr.msk.bf16.mxu1 %vm1398_vm0, %v1397_v0  ;;  %v449_v5 = vld [vmem:[%s377_s23] sm:$0xff]  ;;  %s1401_s26 = smov 64   ;;  %vm604_vm3 = vcmask 1043456   ;;  %vm586_vm4 = vcmask 64512   ;;  %v1157_v57 = vld [vmem:[#allocation10 + $0x8] sm:$0xff]   ;;  %v1158_v58 = vld [vmem:[#allocation10 + $0x10] sm:$0xff]  }
  0xb6   : > { %453 = vrot.lane.b32.xlu0 %v451_v1, %s1399_s15  ;;  %1026 = vmatpush3.bf16.msra.mxu0 %v1151_v2  ;;  %v988_v9 = vld [vmem:[%s1808_s4] ss:$0 sm:$0xff]  ;;  %v1155_v49 = vld [vmem:[%s1809_s5 + $0x8] sm:$0xff]   ;;  %vm779_vm5 = vcmask 523264   ;;  %s1006_s17 = sshll.u32 %s1474_s13, 7  ;;  %s447_s14 = scalar_lea.vmem [#allocation11], %s1689_s1 }
  0xb7   : > { %1027 = vmatprep.subr.bf16.mxu0 %v1397_v0  ;;  %v450_v21 = vld [vmem:[%s395_s30] sm:$0xff]  ;;  %s838_s19 = sshll.u32 %s447_s14, 4  ;;  %s1760_s24 = scalar_lea.hbm %s1813_s9, %s1006_s17  ;;  %s1762_s19 = int_to_ptr.vmem [resolvable:$true] %s838_s19 }
  0xb8   : > { %v1154_v48 = vld [vmem:[%s1809_s5] sm:$0xff]   ;;  %v1156_v56 = vld [vmem:[#allocation10] sm:$0xff]   ;;  %s825_s20 = scalar_lea.sflag [#allocation4], %s1686_s28  ;;  %s1314_s13 = scalar_lea.vmem %s1762_s19, 128 }
  0xb9   : > { %v1159_v59 = vld [vmem:[#allocation10 + $0x18] sm:$0xff]   ;;  %p1315_p6 = scmp.ne.s32.totalorder %s1762_s19, %s1314_s13  ;;  %p1863_p10 = scmp.ne.s32.totalorder %s1846_s29, 0 }
  0xba   : > { %1028 = vmatpush3.bf16.msra.mxu0 %v1152_v3  ;;  %v995_v60 = vld [vmem:[%s1810_s6] ss:$0 sm:$0xff]  ;;  %s1402_s1 = smov [#allocation11]  }
  0xbb   : > { %1029 = vmatprep.subr.bf16.mxu0 %v1397_v0  ;;  %p1316_p8 = pnand %p1315_p6, %p1863_p10 }
  0xbd   : > { %p1317_p9 = pneg %p1316_p8 }
  0xbe   : > { %1030 = vmatpush3.bf16.msra.mxu0 %v1153_v4 }
  0xbf   : > { %1035 = vmatprep.subr.bf16.mxu0 %v1397_v0 }
 0x128   : > { %v454_v6 = vpop.permute.xlu0 %453 }
 0x129   : > { %v457_v7 = vsel %vm456_vm1, %v449_v5, %v454_v6 }
 0x12a   : > { %v458_v8 = vpack.c.bf16 %v457_v7, %v457_v7 }
 0x12c   : > { %1032 = vmatmul.mubr.msk.bf16.vlgmr.msra.gmra.mrb[0].mxu0 %vm490_vm2, %v458_v8 }
 0x12d   : > { %1037 = vmatprep.mubr.msk.bf16.mxu0 %vm1398_vm0, %v1397_v0 }
 0x1ff   : > { %v528_v10 = vpop.f32.mrb[0].mxu0 }
 0x200   : > { %v529_v11 = vadd.f32 %v988_v9, %v528_v10  ;;  %v1033_v12 = vpop.f32.mrb[1].mxu0 }
 0x201   : > { %v531_v13 = vpop.f32.mrb[2].mxu0  ;;  %v999_v12 = vld [vmem:[%s1812_s8] ss:$0 sm:$0xff] }
 0x202   : > { %v534_v14 = vpack.c.bf16 %v529_v11, %v529_v11  ;;  %v1034_v15 = vpop.f32.mrb[3].mxu0 }
 0x204   : > { %536 = vrot.lane.b32.xlu0 %v534_v14, %s1400_s16  ;;  %s1318_s16 = sshll.u32 %s1402_s1, 4  ;;  %s1319_s16 = int_to_ptr.vmem [resolvable:$false] %s1318_s16 }
 0x205   : > { %p1321_p11 = scmp.lt.s32.totalorder %s1762_s19, %s1319_s16 }
 0x208   : > { %599 = vrot.lane.b32.xlu0 %v534_v14, %s1401_s26  ;;  %s1320_s26 = scalar_lea.vmem %s1319_s16, 256 }
 0x209   : > { %p1322_p4 = scmp.lt.s32.totalorder %s1320_s26, %s1314_s13 }
 0x20b   : > { %p1323_p13 = por %p1322_p4, %p1321_p11 }
 0x20d   : > { %p1324_p2 = pnand %p1323_p13, %p1317_p9 }
 0x276   : > { %v537_v16 = vpop.permute.xlu0 %536 }
 0x277   : > { %v542_v17 = vsel %vm456_vm1, %v537_v16, 0 }
 0x278   : > { %1036 = vmatpush3.bf16.xpose.msra.mxu0 %v542_v17 }
 0x279   : > { %1047 = vmatprep.subr.bf16.mxu0 %v1397_v0 }
 0x27a   : > { %v600_v18 = vpop.permute.xlu0 %599 }
 0x27b   : > { %v606_v19 = vsel %vm604_vm3, %v600_v18, 0 }
 0x27c   : > { %1042 = vmatpush3.bf16.msra.mxu1 %v606_v19 }
 0x27d   : > { %1055 = vmatprep.subr.bf16.mxu1 %v1397_v0 }
 0x27f   : > { %1038 = vmatmul.mubr.msk.bf16.vlgmr.msra.gmra.mrb[4].mxu0 %vm456_vm1, %v534_v14 }
 0x280   : > { %1051 = vmatprep.mubr.msk.bf16.mxu0 %vm1398_vm0, %v1397_v0  ;;  %1048 = vmatpush3.bf16.msra.mxu0 %v1154_v48 }
 0x281   : > { %1049 = vmatprep.subr.bf16.mxu0 %v1397_v0 }
 0x284   : > { %1050 = vmatpush3.bf16.msra.mxu0 %v1155_v49 }
 0x352   : > { %v578_v20 = vpop.f32.mrb[4].mxu0 }
 0x353   : > { %v584_v22 = vmul.f32 0.17677669, %v578_v20  ;;  %v1039_v23 = vpop.f32.mrb[5].mxu0 }
 0x354   : > { %v581_v24 = vpop.f32.mrb[6].mxu0 }
 0x355   : > { %v1040_v25 = vpop.f32.mrb[7].mxu0  ;;  %v585_v26 = vmul.f32 %v584_v22, %v450_v21 }
 0x357   : > { %v587_v27 = vsel %vm586_vm4, %v585_v26, -inf }
 0x358   : > { %588 = vmax.xlane.f32.xlu1 %v587_v27 }
 0x3e5   : > { %v589_v28 = vpop.xlane.xlu1 %588 }
 0x3e6   : > { %v590_v29 = vsub.f32 %v585_v26, %v589_v28 }
 0x3e8   : > { %v591_v30 = vmul.f32 1.442695, %v590_v29 }
 0x3ea   : > { %1160 = vpow2.f32 %v591_v30 }
 0x3f4   : > { %v1161_v31 = vpop.eup %1160 }
 0x3f5   : > { %v593_v32 = vsel %vm586_vm4, %v1161_v31, 0.0 }
 0x3f6   : > { %594 = vadd.xlane.f32.xlu1 %v593_v32 }
 0x483   : > { %v595_v33 = vpop.xlane.xlu1 %594 }
 0x484   : > { %1162 = vrcp.f32 %v595_v33 }
 0x48e   : > { %v1163_v34 = vpop.eup %1162 }
 0x48f   : > { %v597_v35 = vmul.f32 %v1163_v34, %v1161_v31 }
 0x491   : > { %v598_v36 = vpack.c.bf16 %v597_v35, %v597_v35 }
 0x493   : > { %1044 = vmatmul.mubr.msk.bf16.vlgmr.msra.gmra.mrb[0].mxu1 %vm586_vm4, %v598_v36 }
 0x494   : > { %1063 = vmatprep.mubr.msk.bf16.mxu1 %vm1398_vm0, %v1397_v0  ;;  %1056 = vmatpush3.bf16.msra.mxu1 %v1156_v56 }
 0x495   : > { %1057 = vmatprep.subr.bf16.mxu1 %v1397_v0 }
 0x498   : > { %1058 = vmatpush3.bf16.msra.mxu1 %v1157_v57 }
 0x499   : > { %1059 = vmatprep.subr.bf16.mxu1 %v1397_v0 }
 0x49c   : > { %1060 = vmatpush3.bf16.msra.mxu1 %v1158_v58 }
 0x49d   : > { %1061 = vmatprep.subr.bf16.mxu1 %v1397_v0 }
 0x4a0   : > { %1062 = vmatpush3.bf16.msra.mxu1 %v1159_v59 }
 0x566   : > { %v642_v37 = vpop.f32.mrb[0].mxu1 }
 0x567   : > { %v648_v38 = vadd.f32 %v642_v37, %v449_v5  ;;  %v1045_v39 = vpop.f32.mrb[1].mxu1 }
 0x568   : > { %v645_v40 = vpop.f32.mrb[2].mxu1 }
 0x569   : > { %v1046_v41 = vpop.f32.mrb[3].mxu1  ;;  %v649_v42 = vsel %vm456_vm1, %v648_v38, 0.0 }
 0x56a   : > { %650 = vadd.xlane.f32.xlu1 %v649_v42 }
 0x5f7   : > { %v651_v43 = vpop.xlane.xlu1 %650 }
 0x5f8   : > { %v653_v44 = vmul.f32 0.03125, %v651_v43 }
 0x5fa   : > { %v654_v45 = vsub.f32 %v648_v38, %v653_v44 }
 0x5fc   : > { %v655_v46 = vmul.f32 %v654_v45, %v654_v45 }
 0x5fe   : > { %v656_v47 = vsel %vm456_vm1, %v655_v46, 0.0 }
 0x5ff   : > { %657 = vadd.xlane.f32.xlu0 %v656_v47 }
 0x68c   : > { %v658_v50 = vpop.xlane.xlu0 %657 }
 0x68d   : > { %v659_v51 = vmul.f32 0.03125, %v658_v50 }
 0x68f   : > { %v660_v52 = vadd.f32 1e-05, %v659_v51 }
 0x691   : > { %1164 = vrsqrt.f32 %v660_v52 }
 0x69b   : > { %v1165_v53 = vpop.eup %1164 }
 0x69c   : > { %v662_v54 = vmul.f32 %v1165_v53, %v654_v45 }
 0x69e   : > { %v663_v55 = vpack.c.bf16 %v662_v54, %v662_v54 }
 0x6a0   : > { %1052 = vmatmul.mubr.msk.bf16.vlgmr.msra.gmra.mrb[8].mxu0 %vm456_vm1, %v663_v55 }
 0x773   : > { %v724_v61 = vpop.f32.mrb[8].mxu0 }
 0x774   : > { %v725_v62 = vadd.f32 %v995_v60, %v724_v61  ;;  %v1053_v63 = vpop.f32.mrb[9].mxu0 }
 0x775   : > { %v727_v1 = vpop.f32.mrb[10].mxu0 }
 0x776   : > { %v730_v2 = vmul.f32 %v725_v62, %v725_v62  ;;  %v1054_v3 = vpop.f32.mrb[11].mxu0 }
 0x778   : > { %v731_v4 = vmul.f32 %v730_v2, %v725_v62 }
 0x77a   : > { %v732_v5 = vmul.f32 0.044715, %v731_v4 }
 0x77c   : > { %v733_v6 = vadd.f32 %v732_v5, %v725_v62 }
 0x77e   : > { %v734_v7 = vmul.f32 0.7978846, %v733_v6 }
 0x780   : > { %1166 = vtanh.f32 %v734_v7 }
 0x78a   : > { %v1167_v0 = vpop.eup %1166 }
 0x78b   : > { %v736_v8 = vadd.f32 1.0, %v1167_v0 }
 0x78d   : > { %v737_v9 = vmul.f32 0.5, %v736_v8 }
 0x78f   : > { %v738_v10 = vmul.f32 %v737_v9, %v725_v62 }
 0x791   : > { %v739_v11 = vpack.c.bf16 %v738_v10, %v738_v10 }
 0x793   : > { %1064 = vmatmul.mubr.msk.bf16.vlgmr.msra.gmra.mrb[4].mxu1 %vm779_vm5, %v739_v11 }
 0x866   : > { %v817_v13 = vpop.f32.mrb[4].mxu1 }
 0x867   : > { %v818_v14 = vadd.f32 %v999_v12, %v817_v13  ;;  %v1065_v15 = vpop.f32.mrb[5].mxu1 }
 0x868   : > { %v820_v16 = vpop.f32.mrb[6].mxu1 }
 0x869   : > { %823 = vst [vmem:[%s447_s14] sm:$0xff] %v818_v14  ;;  %v1066_v17 = vpop.f32.mrb[7].mxu1 }
 0x86a   : > { %1327 = shalt.err (!%p1324_p2)
}
 0x86b   : > { %s1328_s28 = scalar_lea.hbm %s1760_s24, 128  ;;  %s1332_s21 = scalar_lea.hbm %s1813_s9, 256 }
 0x86c   : > { %p1329_p5 = scmp.ne.s32.totalorder %s1760_s24, %s1328_s28  ;;  %p1333_p0 = scmp.lt.u32.totalorder %s1760_s24, %s1813_s9 }
 0x86d   : > { %p1334_p7 = scmp.lt.u32.totalorder %s1332_s21, %s1328_s28  ;;  %p1336_p6 = scmp.lt.u32.totalorder %s1328_s28, %s1760_s24 }
 0x86e   : > { %p1330_p12 = pnand %p1329_p5, %p1863_p10 }
 0x86f   : > { %p1335_p1 = por %p1334_p7, %p1333_p0 }
 0x870   : > { %p1331_p3 = pneg %p1330_p12 }
 0x871   : > { %p1337_p8 = por %p1336_p6, %p1335_p1 }
 0x873   : > { %p1338_p9 = pnand %p1337_p8, %p1331_p3 }
 0x875   : > { %1341 = shalt.err (!%p1338_p9)
}
 0x876   : > { %1081 = dma.vmem_to_hbm [thread:$0]  (%p1863_p10), %s1762_s19, 128, %s1760_s24, %s825_s20  }
 0x877 PF: > { %s1864_s27 = sld [smem:[#allocation16_spill]]  ;;  %s1865_s3 = sld [smem:[#allocation18_spill]] }
 0x878   : > { %s1866_s23 = sld [smem:[#allocation17_spill]] }
 0x87d   : > { %s850_s17 = sand.u32 1, %s1864_s27   ;;  %p1867_p11 = scmp.ne.s32.totalorder %s1865_s3, 0 }
 0x87e   : > { %p1868_p4 = scmp.ge.s32.totalorder %s1866_s23, 2  ;;  %s851_s14 = scalar_lea.sflag [#allocation4], %s850_s17 }
 0x880   : > { %p1101_p13 = pnand %p1868_p4, %p1867_p11 }
 0x882   : > { %1371 = dma.done.wait (!%p1101_p13), %s851_s14, 128  }
 0x883   : > { %1373 = vsyncadd (!%p1101_p13), %s851_s14, 4294967168  ;;  %s1869_s12 = sld [smem:[#allocation19_spill]]  ;;  %s1870_s15 = sld [smem:[#allocation20_spill]] }
 0x884   : > { %s1871_s30 = smov %s1380_s10  ;;  %s1872_s10 = smov %s1384_s11 }
 0x889   : > { %p26_p2 = scmp.ge.s32.totalorder %s1869_s12, 4   ;;  %s1873_s11 = smov %s1870_s15 }
 0x88b   :  { %28 = sbr.rel (!%p26_p2) target bundleno = 11 (0xb), region = 133 }
 0x892   :  { %856 = vsyncpa [#allocation3], 1 }
 0x893   :  { %858 = vsyncpa [#allocation3 + $0x1], 1 }
 0x894   :  { %859 = vsyncpa [#allocation6], 1 }
 0x895   :  { %861 = vsyncpa [#allocation6 + $0x1], 1 }
 0x896   :  { %862 = vsyncpa [#allocation9], 1 }
 0x897   :  { %863 = vsyncpa [#allocation4], 1 }
 0x898   :  { %865 = vsyncpa [#allocation4 + $0x1], 1 }

</bundles_post_ra>
